<compile_context>
chip_gen: v5e
topology: v5e:2x2
jax: 0.10.0
libtpu: 0.0.40
codegen_flags: <defaults>
</compile_context>

<pallas_src>
import functools

import jax
import jax.numpy as jnp
from jax.experimental import pallas as pl
from jax.experimental.pallas import tpu as pltpu


def _round_up(x, m):
    return ((x + m - 1) // m) * m


def _vmem_limits():
    """(tile budget bytes, vmem_limit_bytes), generation-aware."""
    cap = 128 * 1024 * 1024
    try:
        info = pltpu.get_tpu_info()
        cap = int(getattr(info, "vmem_capacity_bytes", cap))
    except Exception:
        pass
    if cap <= 64 * 1024 * 1024:
        # v7x: 64 MiB VMEM per TensorCore -> leave headroom for double-buffered
        # DMAs, output buffers and compiler-internal scratch.
        return 22 * 1024 * 1024, 36 * 1024 * 1024
    # v5e / v6e: 128 MiB VMEM.
    return 32 * 1024 * 1024, 48 * 1024 * 1024


def _distill_kl_kernel(ys_ref, yt_ref, out_ref, *, inv_T, batch_tile, B, C,
                       need_mask, fold_lanes):
    i = pl.program_id(0)

    s = ys_ref[...].astype(jnp.float32) * inv_T
    t = yt_ref[...].astype(jnp.float32) * inv_T

    # Student: only the log-partition is needed (log_p_s is folded below).
    s_max = jnp.max(s, axis=1, keepdims=True)
    s_sh = s - s_max
    log_z_s = jnp.log(jnp.sum(jnp.exp(s_sh), axis=1, keepdims=True))

    # Teacher: softmax + log-partition.
    t_max = jnp.max(t, axis=1, keepdims=True)
    t_sh = t - t_max
    exp_t = jnp.exp(t_sh)
    z_t = jnp.sum(exp_t, axis=1, keepdims=True)
    log_z_t = jnp.log(z_t)
    # Exact reciprocal of the tiny (batch_tile, 1) denominator: kernel is
    # HBM-bound, exactness is free and keeps tight agreement with the ref.
    p_t = exp_t * pl.reciprocal(z_t, approx=False)

    # Fused log-softmax difference:
    #   log_p_t - log_p_s = (t_sh - log_z_t) - (s_sh - log_z_s)
    #                     = (t_sh - s_sh) + (log_z_s - log_z_t)
    row_c = log_z_s - log_z_t                      # (batch_tile, 1)
    kl = p_t * ((t_sh - s_sh) + row_c)             # (batch_tile, C)

    if need_mask:
        # Single select zeroing padded tail rows. Rows are independent along
        # the class axis, so NaN/Inf from garbage OOB rows cannot leak into
        # valid rows; the select simply drops them.
        row = jax.lax.broadcasted_iota(jnp.int32, (batch_tile, 1), 0)
        valid = (i * batch_tile + row) < B
        kl = jnp.where(valid, kl, 0.0)

    # Fold batch rows into an (8, C) lane-dense partial with a pairwise tree
    # (same add count as a serial chain but log depth -> better VALU packing,
    # shorter live range of the big kl temp). All slices are 8-row aligned.
    if batch_tile > 8:
        parts = [kl[g * 8:(g + 1) * 8, :] for g in range(batch_tile // 8)]
        while len(parts) > 1:
            nxt = [parts[a] + parts[a + 1] for a in range(0, len(parts) - 1, 2)]
            if len(parts) % 2:
                nxt.append(parts[-1])
            parts = nxt
        acc = parts[0]
    else:
        acc = kl

    if fold_lanes:
        # Fold 128-lane groups of the class axis too: C/128 extra adds on an
        # 8-row array (negligible) and the writeback shrinks to 4 KiB/step,
        # staying lane-dense and unmasked.
        lane_acc = acc[:, 0:128]
        for g in range(1, C // 128):
            lane_acc = lane_acc + acc[:, g * 128:(g + 1) * 128]
        acc = lane_acc

    out_ref[...] = acc


def distill_kl(y_s, y_t, T, *, batch_tile=None):
    """KL-distillation loss. y_s, y_t: [B, C] logits (f32 or bf16). Returns scalar f32."""
    assert y_s.shape == y_t.shape and y_s.ndim == 2
    B, C = y_s.shape
    itemsize = jnp.dtype(y_s.dtype).itemsize

    budget_bytes, vmem_limit = _vmem_limits()

    if batch_tile is None:
        # Per batch row: double-buffered input DMAs (2 inputs x 2 buffers x
        # itemsize bytes) plus ~7 live f32 (rows, C) temporaries after the
        # fused log-softmax difference. Dtype-aware so bf16 inputs get bigger
        # tiles; capped at 512 rows (HBM roofline ~saturated, halves VMEM).
        per_row = C * (4 * itemsize + 28)
        rows = budget_bytes // max(per_row, 1)
        rows = max(8, min(512, (rows // 8) * 8))
        batch_tile = min(rows, _round_up(B, 8))
    batch_tile = max(8, _round_up(int(batch_tile), 8))

    num_tiles = (B + batch_tile - 1) // batch_tile
    need_mask = (B % batch_tile) != 0
    fold_lanes = (C > 128) and (C % 128 == 0)
    out_C = 128 if fold_lanes else C

    kernel = functools.partial(
        _distill_kl_kernel,
        inv_T=1.0 / float(T),
        batch_tile=batch_tile,
        B=B,
        C=C,
        need_mask=need_mask,
        fold_lanes=fold_lanes,
    )

    partials = pl.pallas_call(
        kernel,
        out_shape=jax.ShapeDtypeStruct((num_tiles * 8, out_C), jnp.float32),
        grid_spec=pltpu.PrefetchScalarGridSpec(
            num_scalar_prefetch=0,
            grid=(num_tiles,),
            in_specs=[
                pl.BlockSpec((batch_tile, C), lambda i: (i, 0)),
                pl.BlockSpec((batch_tile, C), lambda i: (i, 0)),
            ],
            out_specs=pl.BlockSpec((8, out_C), lambda i: (i, 0)),
        ),
        compiler_params=pltpu.CompilerParams(
            dimension_semantics=("parallel",),
            vmem_limit_bytes=vmem_limit,
        ),
    )(y_s, y_t)

    # Tiny final reduction and (T^2 / B) scale outside the kernel.
    return jnp.sum(partials) * (float(T) * float(T) / B)


def _reference(y_s, y_t, T):
    # Pure-JAX reference matching the PyTorch forward.
    p_s = jax.nn.log_softmax(y_s.astype(jnp.float32) / T, axis=1)
    log_p_t = jax.nn.log_softmax(y_t.astype(jnp.float32) / T, axis=1)
    p_t = jnp.exp(log_p_t)
    kl = p_t * (log_p_t - p_s)
    return jnp.sum(kl) * (T ** 2) / y_s.shape[0]


if __name__ == "__main__":
    key = jax.random.PRNGKey(0)
    k1, k2, k3, k4, k5, k6 = jax.random.split(key, 6)
    T = 4.0

    # Case 1: single tile, default (VMEM-budget) tile sizing, f32.
    y_s = jax.random.normal(k1, (16, 128), dtype=jnp.float32)
    y_t = jax.random.normal(k2, (16, 128), dtype=jnp.float32)
    loss = jax.block_until_ready(distill_kl(y_s, y_t, T))
    ref = _reference(y_s, y_t, T)
    assert jnp.allclose(loss, ref, rtol=1e-5, atol=1e-6), (loss, ref)

    # Case 2: multi-tile grid (parallel semantics) + ragged batch (mask path).
    y_s2 = jax.random.normal(k3, (13, 128), dtype=jnp.float32)
    y_t2 = jax.random.normal(k4, (13, 128), dtype=jnp.float32)
    loss2 = jax.block_until_ready(distill_kl(y_s2, y_t2, T, batch_tile=8))
    ref2 = _reference(y_s2, y_t2, T)
    assert jnp.allclose(loss2, ref2, rtol=1e-5, atol=1e-6), (loss2, ref2)

    # Case 3: bf16 logits, C > 128 (lane-fold path), ragged multi-tile.
    y_s3 = jax.random.normal(k5, (20, 256), dtype=jnp.bfloat16)
    y_t3 = jax.random.normal(k6, (20, 256), dtype=jnp.bfloat16)
    loss3 = jax.block_until_ready(distill_kl(y_s3, y_t3, T, batch_tile=16))
    ref3 = _reference(y_s3, y_t3, T)
    assert jnp.allclose(loss3, ref3, rtol=1e-4, atol=1e-5), (loss3, ref3)

    print("KERNEL_OK")
</pallas_src>

<mosaic_0001>
module attributes {stable_mosaic.version = 11 : i64} {
  func.func @_distill_kl_kernel(%arg0: i32, %arg1: memref<16x128xf32, #tpu.memory_space<vmem>>, %arg2: memref<16x128xf32, #tpu.memory_space<vmem>>, %arg3: memref<8x128xf32, #tpu.memory_space<vmem>>) attributes {dimension_semantics = [#tpu.dimension_semantics<parallel>], iteration_bounds = array<i64: 1>, scalar_prefetch = 0 : i64, scratch_operands = 0 : i64, tpu.core_type = #tpu.core_type<tc>, window_params = [{transform_indices = @transform_0, window_bounds = array<i64: 16, 128>}, {transform_indices = @transform_1, window_bounds = array<i64: 16, 128>}, {transform_indices = @transform_2, window_bounds = array<i64: 8, 128>}]} {
    %c0 = arith.constant 0 : index
    %c0_0 = arith.constant 0 : index
    %0 = vector.load %arg1[%c0, %c0_0] : memref<16x128xf32, #tpu.memory_space<vmem>>, vector<16x128xf32>
    %cst = arith.constant 2.500000e-01 : f32
    %1 = vector.broadcast %cst : f32 to vector<16x128xf32>
    %2 = arith.mulf %0, %1 : vector<16x128xf32>
    %c0_1 = arith.constant 0 : index
    %c0_2 = arith.constant 0 : index
    %3 = vector.load %arg2[%c0_1, %c0_2] : memref<16x128xf32, #tpu.memory_space<vmem>>, vector<16x128xf32>
    %cst_3 = arith.constant 2.500000e-01 : f32
    %4 = vector.broadcast %cst_3 : f32 to vector<16x128xf32>
    %5 = arith.mulf %3, %4 : vector<16x128xf32>
    %cst_4 = arith.constant dense<0xFF800000> : vector<16xf32>
    %6 = vector.multi_reduction <maximumf>, %2, %cst_4 [1] : vector<16x128xf32> to vector<16xf32>
    %7 = vector.shape_cast %6 : vector<16xf32> to vector<16x1xf32>
    %8 = vector.broadcast %7 : vector<16x1xf32> to vector<16x128xf32>
    %9 = arith.subf %2, %8 : vector<16x128xf32>
    %10 = math.exp %9 : vector<16x128xf32>
    %cst_5 = arith.constant dense<0.000000e+00> : vector<16xf32>
    %11 = vector.multi_reduction <add>, %10, %cst_5 [1] : vector<16x128xf32> to vector<16xf32>
    %12 = vector.shape_cast %11 : vector<16xf32> to vector<16x1xf32>
    %13 = math.log %12 : vector<16x1xf32>
    %cst_6 = arith.constant dense<0xFF800000> : vector<16xf32>
    %14 = vector.multi_reduction <maximumf>, %5, %cst_6 [1] : vector<16x128xf32> to vector<16xf32>
    %15 = vector.shape_cast %14 : vector<16xf32> to vector<16x1xf32>
    %16 = vector.broadcast %15 : vector<16x1xf32> to vector<16x128xf32>
    %17 = arith.subf %5, %16 : vector<16x128xf32>
    %18 = math.exp %17 : vector<16x128xf32>
    %cst_7 = arith.constant dense<0.000000e+00> : vector<16xf32>
    %19 = vector.multi_reduction <add>, %18, %cst_7 [1] : vector<16x128xf32> to vector<16xf32>
    %20 = vector.shape_cast %19 : vector<16xf32> to vector<16x1xf32>
    %21 = math.log %20 : vector<16x1xf32>
    %22 = tpu.reciprocal %20 : vector<16x1xf32> -> vector<16x1xf32>
    %23 = vector.broadcast %22 : vector<16x1xf32> to vector<16x128xf32>
    %24 = arith.mulf %18, %23 : vector<16x128xf32>
    %25 = arith.subf %13, %21 : vector<16x1xf32>
    %26 = arith.subf %17, %9 : vector<16x128xf32>
    %27 = vector.broadcast %25 : vector<16x1xf32> to vector<16x128xf32>
    %28 = arith.addf %26, %27 : vector<16x128xf32>
    %29 = arith.mulf %24, %28 : vector<16x128xf32>
    %30 = vector.extract_strided_slice %29 {offsets = [0, 0], sizes = [8, 128], strides = [1, 1]} : vector<16x128xf32> to vector<8x128xf32>
    %31 = vector.extract_strided_slice %29 {offsets = [8, 0], sizes = [8, 128], strides = [1, 1]} : vector<16x128xf32> to vector<8x128xf32>
    %32 = arith.addf %30, %31 : vector<8x128xf32>
    %c0_8 = arith.constant 0 : index
    %c0_9 = arith.constant 0 : index
    %33 = vector.load %arg3[%c0_8, %c0_9] : memref<8x128xf32, #tpu.memory_space<vmem>>, vector<8x128xf32>
    tpu.vector_store %arg3[%c0_8, %c0_9], %32 {strides = array<i32>} : memref<8x128xf32, #tpu.memory_space<vmem>>, vector<8x128xf32>,
    return
  }
  func.func @transform_0(%arg0: i32) -> (i32, i32) {
    %c0_i32 = arith.constant 0 : i32
    %c0_i32_0 = arith.constant 0 : i32
    return %arg0, %c0_i32 : i32, i32
  }
  func.func @transform_1(%arg0: i32) -> (i32, i32) {
    %c0_i32 = arith.constant 0 : i32
    %c0_i32_0 = arith.constant 0 : i32
    return %arg0, %c0_i32 : i32, i32
  }
  func.func @transform_2(%arg0: i32) -> (i32, i32) {
    %c0_i32 = arith.constant 0 : i32
    %c0_i32_0 = arith.constant 0 : i32
    return %arg0, %c0_i32 : i32, i32
  }
}

</mosaic_0001>

<bundles_post_ra>
// kernel: tpu_custom_call.1
= control target key start
LH: loop header
LB: loop body
LE: loop exit
PB: predicated region body
PF: predicated region fallthrough
CT: control target
= control target key end

     0   :  { %7 = vsyncpa [#allocation3], 0  ;;  %s297_s0 = inlined_call_operand.hbm [shape: f32[16,128], index: 0, kind: input, shape index: {}]   ;;  %s298_s1 = inlined_call_operand.hbm [shape: f32[16,128], index: 1, kind: input, shape index: {}]   ;;  %s299_s2 = inlined_call_operand.hbm [shape: f32[8,128], index: 2, kind: output, shape index: {}]  }
   0x1   :  { %8 = vsyncpa [#allocation6], 0 }
   0x2   :  { %9 = vsyncpa [#allocation4], 0  ;;  %s14_s11 = sshll.u32 %s297_s0, 4  ;;  %s249_s12 = smov [#allocation2]   ;;  %s15_s11 = int_to_ptr.hbm [resolvable:$true] %s14_s11 }
   0x3   :  { %s16_s13 = sshll.u32 %s249_s12, 4  ;;  %s27_s16 = sshll.u32 %s298_s1, 4  ;;  %s17_s13 = int_to_ptr.vmem [resolvable:$true] %s16_s13  ;;  %s28_s16 = int_to_ptr.hbm [resolvable:$true] %s27_s16 }
   0x4   :  { %s250_s17 = smov 128   ;;  %s251_s18 = smov 8  }
   0x5   :  { %22 = dma.hbm_to_vmem [thread:$0]  %s15_s11, 256, %s17_s13, [#allocation3], %s250_s17, %s250_s17, %s251_s18  }
   0x6   :  { %s252_s19 = smov [#allocation5]  }
   0x7   :  { %s29_s20 = sshll.u32 %s252_s19, 4  ;;  %s30_s20 = int_to_ptr.vmem [resolvable:$true] %s29_s20 }
   0x8   :  { %35 = dma.hbm_to_vmem [thread:$0]  %s28_s16, 256, %s30_s20, [#allocation6], %s250_s17, %s250_s17, %s251_s18  }
   0x9   :  { %243 = dma.done.wait [#allocation3], 256  }
   0xa   :  { %244 = vsyncadd [#allocation3], 4294967040 }
   0xb   :  { %245 = dma.done.wait [#allocation6], 256  }
   0xc   :  { %246 = vsyncadd [#allocation6], 4294967040  ;;  %v48_v0 = vld [vmem:[#allocation5] sm:$0xff]  ;;  %v44_v1 = vld [vmem:[#allocation2] sm:$0xff]  ;;  %s253_s0 = smov [#allocation7]   ;;  %s135_s23 = sshll.u32 %s299_s2, 4  ;;  %s136_s23 = int_to_ptr.hbm [resolvable:$true] %s135_s23 }
   0xd   :  { %v50_v2 = vmul.f32 0.25, %v48_v0  ;;  %v46_v3 = vmul.f32 0.25, %v44_v1  ;;  %v49_v4 = vld [vmem:[#allocation5 + $0x8] sm:$0xff]  ;;  %v45_v5 = vld [vmem:[#allocation2 + $0x8] sm:$0xff]  ;;  %s133_s1 = sshll.u32 %s253_s0, 4  ;;  %s134_s1 = int_to_ptr.vmem [resolvable:$true] %s133_s1 }
   0xe   :  { %v51_v6 = vmul.f32 0.25, %v49_v4  ;;  %v47_v7 = vmul.f32 0.25, %v45_v5 }
   0xf   :  { %70 = vmax.xlane.f32.xlu0 %v50_v2  ;;  %52 = vmax.xlane.f32.xlu1 %v46_v3 }
  0x17   :  { %72 = vmax.xlane.f32.xlu0 %v51_v6  ;;  %54 = vmax.xlane.f32.xlu1 %v47_v7 }
  0x82   :  { %v71_v8 = vpop.xlane.xlu0 %70  ;;  %v53_v9 = vpop.xlane.xlu1 %52 }
  0x83   :  { %v275_v10 = vsub.f32 %v50_v2, %v71_v8  ;;  %v277_v11 = vsub.f32 %v46_v3, %v53_v9 }
  0x85   :  { %v76_v12 = vmul.f32 1.442695, %v275_v10  ;;  %v58_v13 = vmul.f32 1.442695, %v277_v11  ;;  %v120_v14 = vsub.f32 %v275_v10, %v277_v11 }
  0x87   :  { %151 = vpow2.f32 %v76_v12 }
  0x88   :  { %153 = vpow2.f32 %v58_v13 }
  0x8a   :  { %v73_v15 = vpop.xlane.xlu0 %72  ;;  %v55_v16 = vpop.xlane.xlu1 %54 }
  0x8b   :  { %v283_v17 = vsub.f32 %v51_v6, %v73_v15  ;;  %v285_v18 = vsub.f32 %v47_v7, %v55_v16 }
  0x8d   :  { %v152_v19 = vpop.eup %151  ;;  %v78_v20 = vmul.f32 1.442695, %v283_v17  ;;  %v60_v21 = vmul.f32 1.442695, %v285_v18  ;;  %v121_v22 = vsub.f32 %v283_v17, %v285_v18 }
  0x8e   :  { %v154_v23 = vpop.eup %153  ;;  %80 = vadd.xlane.f32.xlu2 %v152_v19 }
  0x8f   :  { %155 = vpow2.f32 %v78_v20  ;;  %62 = vadd.xlane.f32.xlu0 %v154_v23 }
  0x90   :  { %157 = vpow2.f32 %v60_v21 }
  0x95   :  { %v156_v24 = vpop.eup %155 }
  0x96   :  { %v158_v25 = vpop.eup %157  ;;  %82 = vadd.xlane.f32.xlu2 %v156_v24 }
  0x97   :  { %64 = vadd.xlane.f32.xlu1 %v158_v25 }
 0x101   :  { %v81_v26 = vpop.xlane.xlu2 %80 }
 0x102   :  { %159 = vrcp.f32 %v81_v26  ;;  %v63_v27 = vpop.xlane.xlu0 %62  ;;  %v99_v38 = vand.u32 2147483648, %v81_v26  ;;  %vm93_vm1 = vweird.f32 %v81_v26  ;;  %v97_v40 = vand.u32 2147483647, %v81_v26 }
 0x103   :  { %161 = vlog2.f32 %v81_v26 }
 0x104   :  { %163 = vlog2.f32 %v63_v27  ;;  %v100_v49 = vor.u32 1.1754944e-38, %v99_v38  ;;  %vm98_vm3 = vcmp.eq.f32.partialorder %v97_v40, 8.507059e+37 }
 0x108   :  { %v160_v28 = vpop.eup %159 }
 0x109   :  { %v89_v29 = vmul.f32 %v160_v28, %v81_v26  ;;  %v83_v30 = vpop.xlane.xlu2 %82  ;;  %v162_v34 = vpop.eup %161  ;;  %vm94_vm0 = vweird.f32 %v160_v28 }
 0x10a   :  { %165 = vrcp.f32 %v83_v30  ;;  %v65_v31 = vpop.xlane.xlu1 %64  ;;  %v164_v35 = vpop.eup %163  ;;  %vm95_vm2 = vmor %vm93_vm1, %vm94_vm0  ;;  %v85_v43 = vmul.f32 0.6931472, %v162_v34  ;;  %v113_v50 = vand.u32 2147483648, %v83_v30  ;;  %v111_v52 = vand.u32 2147483647, %v83_v30 }
 0x10b   :  { %v90_v32 = vsub.f32 1.0, %v89_v29  ;;  %167 = vlog2.f32 %v83_v30  ;;  %v67_v44 = vmul.f32 0.6931472, %v164_v35  ;;  %vm107_vm5 = vweird.f32 %v83_v30 }
 0x10c   :  { %169 = vlog2.f32 %v65_v31  ;;  %v114_v57 = vor.u32 1.1754944e-38, %v113_v50  ;;  %vm112_vm7 = vcmp.eq.f32.partialorder %v111_v52, 8.507059e+37 }
 0x10d   :  { %v91_v33 = vmul.f32 %v160_v28, %v90_v32  ;;  %v118_v54 = vsub.f32 %v67_v44, %v85_v43 }
 0x10f   :  { %v92_v36 = vadd.f32 %v160_v28, %v91_v33  ;;  %v122_v61 = vadd.f32 %v120_v14, %v118_v54 }
 0x110   :  { %v166_v37 = vpop.eup %165 }
 0x111   :  { %v168_v39 = vpop.eup %167  ;;  %v103_v41 = vmul.f32 %v166_v37, %v83_v30  ;;  %v96_v48 = vsel %vm95_vm2, %v160_v28, %v92_v36  ;;  %vm108_vm4 = vweird.f32 %v166_v37 }
 0x112   :  { %v170_v42 = vpop.eup %169  ;;  %v87_v46 = vmul.f32 0.6931472, %v168_v39  ;;  %v101_v53 = vsel %vm98_vm3, %v100_v49, %v96_v48  ;;  %vm109_vm6 = vmor %vm107_vm5, %vm108_vm4 }
 0x113   :  { %v104_v45 = vsub.f32 1.0, %v103_v41  ;;  %v69_v47 = vmul.f32 0.6931472, %v170_v42  ;;  %v116_v59 = vmul.f32 %v152_v19, %v101_v53 }
 0x115   :  { %v105_v51 = vmul.f32 %v166_v37, %v104_v45  ;;  %v119_v56 = vsub.f32 %v69_v47, %v87_v46  ;;  %v124_v0 = vmul.f32 %v122_v61, %v116_v59 }
 0x117   :  { %v106_v55 = vadd.f32 %v166_v37, %v105_v51  ;;  %v123_v62 = vadd.f32 %v121_v22, %v119_v56 }
 0x119   :  { %v110_v58 = vsel %vm109_vm6, %v166_v37, %v106_v55 }
 0x11a   :  { %v115_v60 = vsel %vm112_vm7, %v114_v57, %v110_v58 }
 0x11b   :  { %v117_v63 = vmul.f32 %v156_v24, %v115_v60 }
 0x11d   :  { %v125_v1 = vmul.f32 %v123_v62, %v117_v63 }
 0x11f   :  { %v126_v2 = vadd.f32 %v125_v1, %v124_v0 }
 0x121   :  { %127 = vst [vmem:[#allocation7] sm:$0xff] %v126_v2 }
 0x122   :  { %138 = dma.vmem_to_hbm [thread:$0]  %s134_s1, 128, %s136_s23, [#allocation4]  }
 0x123   :  { %247 = dma.done.wait [#allocation4], 128  }
 0x124   :  { %248 = vsyncadd [#allocation4], 4294967168 }
 0x125   :  { %143 = vsyncpa [#allocation3], 1 }
 0x126   :  { %144 = vsyncpa [#allocation6], 1 }
 0x127   :  { %145 = vsyncpa [#allocation4], 1 }

</bundles_post_ra>
